<compile_context>
chip_gen: v5e
topology: v5e:2x2
jax: 0.10.0
libtpu: 0.0.40
codegen_flags: <defaults>
</compile_context>

<pallas_src>
import numpy as np
import jax
import jax.numpy as jnp
from jax.experimental import pallas as pl
from jax.experimental.pallas import tpu as pltpu

DIM = 32            # dim_drug
IN_FEAT = 77        # fixed by the module (GCNConv(77, dim_drug), first GIN MLP)
F_PAD = 96          # 77 padded so that 32 + F_PAD == 128 (one MXU output tile)
BN_EPS = 1e-5
NEG = -1e30


def _mm(a, b):
    return jnp.dot(a, b, preferred_element_type=jnp.float32)


def _bn(m, gamma, beta):
    # BatchNorm1d, training mode, two-pass statistics over the node dimension
    # (avoids E[x^2] - E[x]^2 cancellation).
    inv_n = 1.0 / m.shape[0]
    mean = jnp.sum(m, axis=0, keepdims=True) * inv_n
    c = m - mean
    var = jnp.sum(c * c, axis=0, keepdims=True) * inv_n
    return c * jax.lax.rsqrt(var + BN_EPS) * gamma + beta


def clgf_gnn_drug_kernel(x_ref, a_ref, dinv_ref, onehot_ref,
                         gcn1_w_ref, gcn1_b_ref, gcn2_w_ref, gcn2_b_ref,
                         gin_w1a_ref, gin_w1b_ref, gin_w1c_ref, gin_w2_ref,
                         gin_b1_ref, gin_b2_ref, bn_g_ref, bn_b_ref,
                         out_ref):
    x = x_ref[...]                       # (N, F_PAD) f32, zero-padded features
    a = a_ref[...]                       # (N, N) bf16, A + I (exact in bf16)
    dinv = dinv_ref[...]                 # (N, 1) f32

    def prop(rhs_f32):
        # (A+I) @ rhs with ~f32 accuracy on the bf16 MXU: (A+I) is exact in
        # bf16 and the f32 RHS is split hi/lo so the cast residual is second
        # order (~1e-5 relative).  Two bf16 MXU passes, f32 accumulation.
        hi = rhs_f32.astype(jnp.bfloat16)
        lo = (rhs_f32 - hi.astype(jnp.float32)).astype(jnp.bfloat16)
        return _mm(a, hi) + _mm(a, lo)

    # ---- round 1: one N x N sweep for GCN layer 1 + GIN layer 0 aggregation ----
    z1 = dinv * _mm(x, gcn1_w_ref[...])                       # (N, 32)
    p1 = prop(jnp.concatenate([z1, x], axis=-1))              # (N, 128) f32
    x_gcn1 = jnp.maximum(dinv * p1[:, :DIM] + gcn1_b_ref[...], 0.0)
    # GIN layer 0: lanes 32:128 of p1 selected via zero rows of gin_w1a.
    m = jnp.maximum(_mm(p1, gin_w1a_ref[...]) + gin_b1_ref[0], 0.0)
    m = _mm(m, gin_w2_ref[0]) + gin_b2_ref[0]
    h1 = _bn(jnp.maximum(m, 0.0), bn_g_ref[0], bn_b_ref[0])

    # ---- round 2: one N x N sweep for GCN layer 2 + GIN layer 1 aggregation ----
    z2 = dinv * _mm(x_gcn1, gcn2_w_ref[...])                  # (N, 32)
    p2 = prop(jnp.concatenate([z2, h1], axis=-1))             # (N, 64) f32
    x_gcn2 = jnp.maximum(dinv * p2[:, :DIM] + gcn2_b_ref[...], 0.0)
    m = jnp.maximum(_mm(p2, gin_w1b_ref[...]) + gin_b1_ref[1], 0.0)
    m = _mm(m, gin_w2_ref[1]) + gin_b2_ref[1]
    h2 = _bn(jnp.maximum(m, 0.0), bn_g_ref[1], bn_b_ref[1])

    # ---- round 3: GIN layer 2 aggregation only ----
    agg3 = prop(h2)                                           # (N, 32) f32
    m = jnp.maximum(_mm(agg3, gin_w1c_ref[...]) + gin_b1_ref[2], 0.0)
    m = _mm(m, gin_w2_ref[2]) + gin_b2_ref[2]
    h3 = _bn(jnp.maximum(m, 0.0), bn_g_ref[2], bn_b_ref[2])

    # ---- per-graph global max pooling: one lane-dense slab, one max per graph,
    #      one lane-dense output store ----
    slab = jnp.concatenate(
        [x_gcn1, x_gcn2, x_gcn1 + x_gcn2, x_gcn1 * x_gcn2,          # j_mgcn
         h1, h2, h3, h1 + h2 + h3, h1 * h2 * h3], axis=-1)          # j_mgin
    onehot = onehot_ref[...]                                  # (N, G) f32
    num_graphs = onehot.shape[1]
    rows = []
    # TODO(synk): switch to lax.fori_loop + dynamic row stores for large G.
    for g in range(num_graphs):
        neg_bias = (onehot[:, g:g + 1] - 1.0) * jnp.float32(-NEG)   # 0 / -1e30
        rows.append(jnp.max(slab + neg_bias, axis=0, keepdims=True))
    out_ref[...] = jnp.concatenate(rows, axis=0)              # (G, 288), one store


def clgf_gnn_drug(x, a_gin, dinv, onehot_t, params):
    """x: (N, 77) f32; a_gin: (N, N) = A + I; dinv: (N, 1); onehot_t: (N, G)."""
    N = x.shape[0]
    num_graphs = onehot_t.shape[1]
    z32 = jnp.zeros((DIM, DIM), jnp.float32)

    x_pad = jnp.pad(x, ((0, 0), (0, F_PAD - IN_FEAT)))
    gcn1_w = jnp.pad(params["gcn1_w"], ((0, F_PAD - IN_FEAT), (0, 0)))
    # GIN first-linear weights, zero-row-padded so they consume the packed
    # propagation result directly (lanes 0..31 hold the GCN slice -> zero rows).
    gin_w1a = jnp.concatenate(
        [z32, params["gin0_w1"],
         jnp.zeros((F_PAD - IN_FEAT, DIM), jnp.float32)], axis=0)    # (128, 32)
    gin_w1b = jnp.concatenate([z32, params["gin1_w1"]], axis=0)      # (64, 32)
    gin_w1c = params["gin2_w1"]                                      # (32, 32)
    gin_w2 = jnp.stack([params[f"gin{i}_w2"] for i in range(3)])     # (3, 32, 32)
    gin_b1 = jnp.stack([params[f"gin{i}_b1"] for i in range(3)])     # (3, 1, 32)
    gin_b2 = jnp.stack([params[f"gin{i}_b2"] for i in range(3)])
    bn_g = jnp.stack([params[f"bn{i}_gamma"] for i in range(3)])
    bn_b = jnp.stack([params[f"bn{i}_beta"] for i in range(3)])

    inputs = [x_pad, a_gin.astype(jnp.bfloat16), dinv, onehot_t,
              gcn1_w, params["gcn1_b"], params["gcn2_w"], params["gcn2_b"],
              gin_w1a, gin_w1b, gin_w1c, gin_w2,
              gin_b1, gin_b2, bn_g, bn_b]

    # VMEM budget from actual need (bf16 A + padded x + f32 per-node temps +
    # tiny params), 2x headroom, capped well under v7x's 64 MiB physical VMEM.
    a_bytes = 2 * N * N
    node_bytes = N * ((F_PAD + 4 * 128 + 9 * DIM) * 4)   # x, packed rhs hi/lo, slab, slack
    vmem_need = a_bytes + node_bytes + (1 << 20)
    vmem_limit = int(min(max(2 * vmem_need, 8 << 20), 48 << 20))

    # TODO(synk): for large N (A no longer VMEM-resident) add a row-tiled grid
    # that streams (A+I) row blocks (BlockSpec / emit_pipeline) with a
    # "parallel" axis for v7x megacore and two-phase BatchNorm statistics; at
    # demo sizes the monolithic VMEM-resident kernel is already minimal.
    vmem = pl.BlockSpec(memory_space=pltpu.MemorySpace.VMEM)
    return pl.pallas_call(
        clgf_gnn_drug_kernel,
        out_shape=jax.ShapeDtypeStruct((num_graphs, 9 * DIM), jnp.float32),
        in_specs=[vmem] * len(inputs),
        out_specs=vmem,
        compiler_params=pltpu.CompilerParams(vmem_limit_bytes=vmem_limit),
    )(*inputs)


def reference(x, a_gcn, a_gin, onehot_t, params):
    """Pure-JAX f32 reference mirroring the PyTorch forward semantics."""
    mm = lambda a, b: jnp.dot(a, b, precision=jax.lax.Precision.HIGHEST)
    x_gcn1 = jnp.maximum(mm(a_gcn, mm(x, params["gcn1_w"])) + params["gcn1_b"], 0.0)
    x_gcn2 = jnp.maximum(mm(a_gcn, mm(x_gcn1, params["gcn2_w"])) + params["gcn2_b"], 0.0)
    j_mgcn = jnp.concatenate([x_gcn1, x_gcn2, x_gcn1 + x_gcn2, x_gcn1 * x_gcn2], -1)

    h = x
    hs = []
    for i in range(3):
        agg = mm(a_gin, h)
        m = jnp.maximum(mm(agg, params[f"gin{i}_w1"]) + params[f"gin{i}_b1"], 0.0)
        m = mm(m, params[f"gin{i}_w2"]) + params[f"gin{i}_b2"]
        m = jnp.maximum(m, 0.0)
        mean = jnp.mean(m, axis=0, keepdims=True)
        var = jnp.mean((m - mean) ** 2, axis=0, keepdims=True)
        h = (m - mean) * jax.lax.rsqrt(var + BN_EPS) * params[f"bn{i}_gamma"] + params[f"bn{i}_beta"]
        hs.append(h)
    h1, h2, h3 = hs
    j_mgin = jnp.concatenate([h1, h2, h3, h1 + h2 + h3, h1 * h2 * h3], -1)
    fused = jnp.concatenate([j_mgcn, j_mgin], -1)

    rows = []
    for g in range(onehot_t.shape[1]):
        mask = onehot_t[:, g:g + 1] > 0.5
        rows.append(jnp.max(jnp.where(mask, fused, NEG), axis=0, keepdims=True))
    return jnp.concatenate(rows, axis=0)


if __name__ == "__main__":
    key = jax.random.PRNGKey(0)
    num_graphs, nodes_per_graph = 2, 8
    N = num_graphs * nodes_per_graph

    # Small undirected ring graph per molecule (PyG edge_index semantics: src -> dst).
    src, dst = [], []
    for g in range(num_graphs):
        base = g * nodes_per_graph
        for i in range(nodes_per_graph):
            a, b = base + i, base + (i + 1) % nodes_per_graph
            src += [a, b]
            dst += [b, a]
    A = np.zeros((N, N), np.float32)
    A[np.array(dst), np.array(src)] = 1.0               # aggregate messages src -> dst

    a_gin_np = A + np.eye(N, dtype=np.float32)          # GINConv: (A + I) @ h (eps = 0)
    deg = a_gin_np.sum(axis=1)
    dinv_np = (1.0 / np.sqrt(deg)).astype(np.float32)
    a_gcn_np = (dinv_np[:, None] * a_gin_np) * dinv_np[None, :]   # D^-1/2 (A+I) D^-1/2

    batch = np.repeat(np.arange(num_graphs), nodes_per_graph)
    onehot_np = (batch[:, None] == np.arange(num_graphs)[None, :]).astype(np.float32)

    keys = jax.random.split(key, 20)
    x = jax.random.normal(keys[0], (N, IN_FEAT), jnp.float32)

    def dense(k, fan_in, fan_out):
        return 0.1 * jax.random.normal(k, (fan_in, fan_out), jnp.float32)

    params = {
        "gcn1_w": dense(keys[1], IN_FEAT, DIM),
        "gcn1_b": 0.1 * jax.random.normal(keys[2], (1, DIM), jnp.float32),
        "gcn2_w": dense(keys[3], DIM, DIM),
        "gcn2_b": 0.1 * jax.random.normal(keys[4], (1, DIM), jnp.float32),
    }
    kidx = 5
    for i in range(3):
        fan_in = IN_FEAT if i == 0 else DIM
        params[f"gin{i}_w1"] = dense(keys[kidx], fan_in, DIM); kidx += 1
        params[f"gin{i}_b1"] = 0.1 * jax.random.normal(keys[kidx], (1, DIM), jnp.float32); kidx += 1
        params[f"gin{i}_w2"] = dense(keys[kidx], DIM, DIM); kidx += 1
        params[f"gin{i}_b2"] = 0.1 * jax.random.normal(keys[kidx], (1, DIM), jnp.float32); kidx += 1
        params[f"bn{i}_gamma"] = jnp.ones((1, DIM), jnp.float32)
        params[f"bn{i}_beta"] = jnp.zeros((1, DIM), jnp.float32)

    x_j = jnp.asarray(x)
    a_gin_j = jnp.asarray(a_gin_np)
    dinv_j = jnp.asarray(dinv_np.reshape(N, 1))
    onehot_j = jnp.asarray(onehot_np)

    out = clgf_gnn_drug(x_j, a_gin_j, dinv_j, onehot_j, params)
    out = jax.block_until_ready(out)

    assert out.shape == (num_graphs, 9 * DIM)
    assert bool(jnp.all(jnp.isfinite(out)))

    ref = reference(x_j, jnp.asarray(a_gcn_np), a_gin_j, onehot_j, params)
    # hi/lo split propagation => ~f32 accuracy even through BatchNorm, so the
    # tolerance can be much tighter than the previous bf16-only version.
    np.testing.assert_allclose(np.asarray(out), np.asarray(ref), rtol=5e-3, atol=5e-3)

    print("KERNEL_OK")
</pallas_src>

<mosaic_0001>
module attributes {stable_mosaic.version = 11 : i64} {
  func.func @clgf_gnn_drug_kernel(%arg0: memref<16x96xf32, #tpu.memory_space<vmem>>, %arg1: memref<16x16xbf16, #tpu.memory_space<vmem>>, %arg2: memref<16x1xf32, #tpu.memory_space<vmem>>, %arg3: memref<16x2xf32, #tpu.memory_space<vmem>>, %arg4: memref<96x32xf32, #tpu.memory_space<vmem>>, %arg5: memref<1x32xf32, #tpu.memory_space<vmem>>, %arg6: memref<32x32xf32, #tpu.memory_space<vmem>>, %arg7: memref<1x32xf32, #tpu.memory_space<vmem>>, %arg8: memref<128x32xf32, #tpu.memory_space<vmem>>, %arg9: memref<64x32xf32, #tpu.memory_space<vmem>>, %arg10: memref<32x32xf32, #tpu.memory_space<vmem>>, %arg11: memref<3x32x32xf32, #tpu.memory_space<vmem>>, %arg12: memref<3x1x32xf32, #tpu.memory_space<vmem>>, %arg13: memref<3x1x32xf32, #tpu.memory_space<vmem>>, %arg14: memref<3x1x32xf32, #tpu.memory_space<vmem>>, %arg15: memref<3x1x32xf32, #tpu.memory_space<vmem>>, %arg16: memref<2x288xf32, #tpu.memory_space<vmem>>) attributes {dimension_semantics = [], scalar_prefetch = 0 : i64, scratch_operands = 0 : i64, tpu.core_type = #tpu.core_type<tc>} {
    %c0 = arith.constant 0 : index
    %c0_0 = arith.constant 0 : index
    %0 = vector.load %arg0[%c0, %c0_0] : memref<16x96xf32, #tpu.memory_space<vmem>>, vector<16x96xf32>
    %c0_1 = arith.constant 0 : index
    %c0_2 = arith.constant 0 : index
    %1 = vector.load %arg1[%c0_1, %c0_2] : memref<16x16xbf16, #tpu.memory_space<vmem>>, vector<16x16xbf16>
    %c0_3 = arith.constant 0 : index
    %c0_4 = arith.constant 0 : index
    %2 = vector.load %arg2[%c0_3, %c0_4] : memref<16x1xf32, #tpu.memory_space<vmem>>, vector<16x1xf32>
    %c0_5 = arith.constant 0 : index
    %c0_6 = arith.constant 0 : index
    %3 = vector.load %arg4[%c0_5, %c0_6] : memref<96x32xf32, #tpu.memory_space<vmem>>, vector<96x32xf32>
    %cst = arith.constant dense<0.000000e+00> : vector<16x32xf32>
    %4 = tpu.matmul %0, %3, %cst {dimension_numbers = #tpu.dot_dimension_numbers<[1], [0], [0], [1], [0, 0, 1, 1], [], []>} : vector<16x96xf32>, vector<96x32xf32>, vector<16x32xf32> -> vector<16x32xf32>
    %5 = vector.broadcast %2 : vector<16x1xf32> to vector<16x32xf32>
    %6 = arith.mulf %5, %4 : vector<16x32xf32>
    %7 = tpu.concatenate %6, %0 in 1 : vector<16x32xf32>, vector<16x96xf32> -> vector<16x128xf32>
    %8 = arith.truncf %7 : vector<16x128xf32> to vector<16x128xbf16>
    %9 = arith.extf %8 : vector<16x128xbf16> to vector<16x128xf32>
    %10 = arith.subf %7, %9 : vector<16x128xf32>
    %11 = arith.truncf %10 : vector<16x128xf32> to vector<16x128xbf16>
    %cst_7 = arith.constant dense<0.000000e+00> : vector<16x128xf32>
    %12 = tpu.matmul %1, %8, %cst_7 {dimension_numbers = #tpu.dot_dimension_numbers<[1], [0], [0], [1], [0, 0, 1, 1], [], []>} : vector<16x16xbf16>, vector<16x128xbf16>, vector<16x128xf32> -> vector<16x128xf32>
    %cst_8 = arith.constant dense<0.000000e+00> : vector<16x128xf32>
    %13 = tpu.matmul %1, %11, %cst_8 {dimension_numbers = #tpu.dot_dimension_numbers<[1], [0], [0], [1], [0, 0, 1, 1], [], []>} : vector<16x16xbf16>, vector<16x128xbf16>, vector<16x128xf32> -> vector<16x128xf32>
    %14 = arith.addf %12, %13 : vector<16x128xf32>
    %15 = vector.extract_strided_slice %14 {offsets = [0, 0], sizes = [16, 32], strides = [1, 1]} : vector<16x128xf32> to vector<16x32xf32>
    %16 = vector.broadcast %2 : vector<16x1xf32> to vector<16x32xf32>
    %17 = arith.mulf %16, %15 : vector<16x32xf32>
    %c0_9 = arith.constant 0 : index
    %c0_10 = arith.constant 0 : index
    %18 = vector.load %arg5[%c0_9, %c0_10] : memref<1x32xf32, #tpu.memory_space<vmem>>, vector<1x32xf32>
    %19 = vector.broadcast %18 : vector<1x32xf32> to vector<16x32xf32>
    %20 = arith.addf %17, %19 : vector<16x32xf32>
    %cst_11 = arith.constant 0.000000e+00 : f32
    %21 = vector.broadcast %cst_11 : f32 to vector<16x32xf32>
    %22 = arith.maximumf %20, %21 : vector<16x32xf32>
    %c0_12 = arith.constant 0 : index
    %c0_13 = arith.constant 0 : index
    %23 = vector.load %arg8[%c0_12, %c0_13] : memref<128x32xf32, #tpu.memory_space<vmem>>, vector<128x32xf32>
    %cst_14 = arith.constant dense<0.000000e+00> : vector<16x32xf32>
    %24 = tpu.matmul %14, %23, %cst_14 {dimension_numbers = #tpu.dot_dimension_numbers<[1], [0], [0], [1], [0, 0, 1, 1], [], []>} : vector<16x128xf32>, vector<128x32xf32>, vector<16x32xf32> -> vector<16x32xf32>
    %c0_15 = arith.constant 0 : index
    %c0_16 = arith.constant 0 : index
    %c0_17 = arith.constant 0 : index
    %25 = vector.load %arg12[%c0_15, %c0_16, %c0_17] : memref<3x1x32xf32, #tpu.memory_space<vmem>>, vector<1x1x32xf32>
    %26 = vector.shape_cast %25 : vector<1x1x32xf32> to vector<1x32xf32>
    %27 = vector.broadcast %26 : vector<1x32xf32> to vector<16x32xf32>
    %28 = arith.addf %24, %27 : vector<16x32xf32>
    %cst_18 = arith.constant 0.000000e+00 : f32
    %29 = vector.broadcast %cst_18 : f32 to vector<16x32xf32>
    %30 = arith.maximumf %28, %29 : vector<16x32xf32>
    %c0_19 = arith.constant 0 : index
    %c0_20 = arith.constant 0 : index
    %c0_21 = arith.constant 0 : index
    %31 = vector.load %arg11[%c0_19, %c0_20, %c0_21] : memref<3x32x32xf32, #tpu.memory_space<vmem>>, vector<1x32x32xf32>
    %32 = vector.shape_cast %31 : vector<1x32x32xf32> to vector<32x32xf32>
    %cst_22 = arith.constant dense<0.000000e+00> : vector<16x32xf32>
    %33 = tpu.matmul %30, %32, %cst_22 {dimension_numbers = #tpu.dot_dimension_numbers<[1], [0], [0], [1], [0, 0, 1, 1], [], []>} : vector<16x32xf32>, vector<32x32xf32>, vector<16x32xf32> -> vector<16x32xf32>
    %c0_23 = arith.constant 0 : index
    %c0_24 = arith.constant 0 : index
    %c0_25 = arith.constant 0 : index
    %34 = vector.load %arg13[%c0_23, %c0_24, %c0_25] : memref<3x1x32xf32, #tpu.memory_space<vmem>>, vector<1x1x32xf32>
    %35 = vector.shape_cast %34 : vector<1x1x32xf32> to vector<1x32xf32>
    %36 = vector.broadcast %35 : vector<1x32xf32> to vector<16x32xf32>
    %37 = arith.addf %33, %36 : vector<16x32xf32>
    %cst_26 = arith.constant 0.000000e+00 : f32
    %38 = vector.broadcast %cst_26 : f32 to vector<16x32xf32>
    %39 = arith.maximumf %37, %38 : vector<16x32xf32>
    %c0_27 = arith.constant 0 : index
    %c0_28 = arith.constant 0 : index
    %c0_29 = arith.constant 0 : index
    %40 = vector.load %arg14[%c0_27, %c0_28, %c0_29] : memref<3x1x32xf32, #tpu.memory_space<vmem>>, vector<1x1x32xf32>
    %41 = vector.shape_cast %40 : vector<1x1x32xf32> to vector<1x32xf32>
    %c0_30 = arith.constant 0 : index
    %c0_31 = arith.constant 0 : index
    %c0_32 = arith.constant 0 : index
    %42 = vector.load %arg15[%c0_30, %c0_31, %c0_32] : memref<3x1x32xf32, #tpu.memory_space<vmem>>, vector<1x1x32xf32>
    %43 = vector.shape_cast %42 : vector<1x1x32xf32> to vector<1x32xf32>
    %cst_33 = arith.constant dense<0.000000e+00> : vector<32xf32>
    %44 = vector.multi_reduction <add>, %39, %cst_33 [0] : vector<16x32xf32> to vector<32xf32>
    %45 = vector.shape_cast %44 : vector<32xf32> to vector<1x32xf32>
    %cst_34 = arith.constant 6.250000e-02 : f32
    %46 = vector.broadcast %cst_34 : f32 to vector<1x32xf32>
    %47 = arith.mulf %45, %46 : vector<1x32xf32>
    %48 = vector.broadcast %47 : vector<1x32xf32> to vector<16x32xf32>
    %49 = arith.subf %39, %48 : vector<16x32xf32>
    %50 = arith.mulf %49, %49 : vector<16x32xf32>
    %cst_35 = arith.constant dense<0.000000e+00> : vector<32xf32>
    %51 = vector.multi_reduction <add>, %50, %cst_35 [0] : vector<16x32xf32> to vector<32xf32>
    %52 = vector.shape_cast %51 : vector<32xf32> to vector<1x32xf32>
    %cst_36 = arith.constant 6.250000e-02 : f32
    %53 = vector.broadcast %cst_36 : f32 to vector<1x32xf32>
    %54 = arith.mulf %52, %53 : vector<1x32xf32>
    %cst_37 = arith.constant 9.99999974E-6 : f32
    %55 = vector.broadcast %cst_37 : f32 to vector<1x32xf32>
    %56 = arith.addf %54, %55 : vector<1x32xf32>
    %57 = math.rsqrt %56 : vector<1x32xf32>
    %58 = vector.broadcast %57 : vector<1x32xf32> to vector<16x32xf32>
    %59 = arith.mulf %49, %58 : vector<16x32xf32>
    %60 = vector.broadcast %41 : vector<1x32xf32> to vector<16x32xf32>
    %61 = arith.mulf %59, %60 : vector<16x32xf32>
    %62 = vector.broadcast %43 : vector<1x32xf32> to vector<16x32xf32>
    %63 = arith.addf %61, %62 : vector<16x32xf32>
    %c0_38 = arith.constant 0 : index
    %c0_39 = arith.constant 0 : index
    %64 = vector.load %arg6[%c0_38, %c0_39] : memref<32x32xf32, #tpu.memory_space<vmem>>, vector<32x32xf32>
    %cst_40 = arith.constant dense<0.000000e+00> : vector<16x32xf32>
    %65 = tpu.matmul %22, %64, %cst_40 {dimension_numbers = #tpu.dot_dimension_numbers<[1], [0], [0], [1], [0, 0, 1, 1], [], []>} : vector<16x32xf32>, vector<32x32xf32>, vector<16x32xf32> -> vector<16x32xf32>
    %66 = vector.broadcast %2 : vector<16x1xf32> to vector<16x32xf32>
    %67 = arith.mulf %66, %65 : vector<16x32xf32>
    %68 = tpu.concatenate %67, %63 in 1 : vector<16x32xf32>, vector<16x32xf32> -> vector<16x64xf32>
    %69 = arith.truncf %68 : vector<16x64xf32> to vector<16x64xbf16>
    %70 = arith.extf %69 : vector<16x64xbf16> to vector<16x64xf32>
    %71 = arith.subf %68, %70 : vector<16x64xf32>
    %72 = arith.truncf %71 : vector<16x64xf32> to vector<16x64xbf16>
    %cst_41 = arith.constant dense<0.000000e+00> : vector<16x64xf32>
    %73 = tpu.matmul %1, %69, %cst_41 {dimension_numbers = #tpu.dot_dimension_numbers<[1], [0], [0], [1], [0, 0, 1, 1], [], []>} : vector<16x16xbf16>, vector<16x64xbf16>, vector<16x64xf32> -> vector<16x64xf32>
    %cst_42 = arith.constant dense<0.000000e+00> : vector<16x64xf32>
    %74 = tpu.matmul %1, %72, %cst_42 {dimension_numbers = #tpu.dot_dimension_numbers<[1], [0], [0], [1], [0, 0, 1, 1], [], []>} : vector<16x16xbf16>, vector<16x64xbf16>, vector<16x64xf32> -> vector<16x64xf32>
    %75 = arith.addf %73, %74 : vector<16x64xf32>
    %76 = vector.extract_strided_slice %75 {offsets = [0, 0], sizes = [16, 32], strides = [1, 1]} : vector<16x64xf32> to vector<16x32xf32>
    %77 = vector.broadcast %2 : vector<16x1xf32> to vector<16x32xf32>
    %78 = arith.mulf %77, %76 : vector<16x32xf32>
    %c0_43 = arith.constant 0 : index
    %c0_44 = arith.constant 0 : index
    %79 = vector.load %arg7[%c0_43, %c0_44] : memref<1x32xf32, #tpu.memory_space<vmem>>, vector<1x32xf32>
    %80 = vector.broadcast %79 : vector<1x32xf32> to vector<16x32xf32>
    %81 = arith.addf %78, %80 : vector<16x32xf32>
    %cst_45 = arith.constant 0.000000e+00 : f32
    %82 = vector.broadcast %cst_45 : f32 to vector<16x32xf32>
    %83 = arith.maximumf %81, %82 : vector<16x32xf32>
    %c0_46 = arith.constant 0 : index
    %c0_47 = arith.constant 0 : index
    %84 = vector.load %arg9[%c0_46, %c0_47] : memref<64x32xf32, #tpu.memory_space<vmem>>, vector<64x32xf32>
    %cst_48 = arith.constant dense<0.000000e+00> : vector<16x32xf32>
    %85 = tpu.matmul %75, %84, %cst_48 {dimension_numbers = #tpu.dot_dimension_numbers<[1], [0], [0], [1], [0, 0, 1, 1], [], []>} : vector<16x64xf32>, vector<64x32xf32>, vector<16x32xf32> -> vector<16x32xf32>
    %c1 = arith.constant 1 : index
    %c0_49 = arith.constant 0 : index
    %c0_50 = arith.constant 0 : index
    %86 = vector.load %arg12[%c1, %c0_49, %c0_50] : memref<3x1x32xf32, #tpu.memory_space<vmem>>, vector<1x1x32xf32>
    %87 = vector.shape_cast %86 : vector<1x1x32xf32> to vector<1x32xf32>
    %88 = vector.broadcast %87 : vector<1x32xf32> to vector<16x32xf32>
    %89 = arith.addf %85, %88 : vector<16x32xf32>
    %cst_51 = arith.constant 0.000000e+00 : f32
    %90 = vector.broadcast %cst_51 : f32 to vector<16x32xf32>
    %91 = arith.maximumf %89, %90 : vector<16x32xf32>
    %c1_52 = arith.constant 1 : index
    %c0_53 = arith.constant 0 : index
    %c0_54 = arith.constant 0 : index
    %92 = vector.load %arg11[%c1_52, %c0_53, %c0_54] : memref<3x32x32xf32, #tpu.memory_space<vmem>>, vector<1x32x32xf32>
    %93 = vector.shape_cast %92 : vector<1x32x32xf32> to vector<32x32xf32>
    %cst_55 = arith.constant dense<0.000000e+00> : vector<16x32xf32>
    %94 = tpu.matmul %91, %93, %cst_55 {dimension_numbers = #tpu.dot_dimension_numbers<[1], [0], [0], [1], [0, 0, 1, 1], [], []>} : vector<16x32xf32>, vector<32x32xf32>, vector<16x32xf32> -> vector<16x32xf32>
    %c1_56 = arith.constant 1 : index
    %c0_57 = arith.constant 0 : index
    %c0_58 = arith.constant 0 : index
    %95 = vector.load %arg13[%c1_56, %c0_57, %c0_58] : memref<3x1x32xf32, #tpu.memory_space<vmem>>, vector<1x1x32xf32>
    %96 = vector.shape_cast %95 : vector<1x1x32xf32> to vector<1x32xf32>
    %97 = vector.broadcast %96 : vector<1x32xf32> to vector<16x32xf32>
    %98 = arith.addf %94, %97 : vector<16x32xf32>
    %cst_59 = arith.constant 0.000000e+00 : f32
    %99 = vector.broadcast %cst_59 : f32 to vector<16x32xf32>
    %100 = arith.maximumf %98, %99 : vector<16x32xf32>
    %c1_60 = arith.constant 1 : index
    %c0_61 = arith.constant 0 : index
    %c0_62 = arith.constant 0 : index
    %101 = vector.load %arg14[%c1_60, %c0_61, %c0_62] : memref<3x1x32xf32, #tpu.memory_space<vmem>>, vector<1x1x32xf32>
    %102 = vector.shape_cast %101 : vector<1x1x32xf32> to vector<1x32xf32>
    %c1_63 = arith.constant 1 : index
    %c0_64 = arith.constant 0 : index
    %c0_65 = arith.constant 0 : index
    %103 = vector.load %arg15[%c1_63, %c0_64, %c0_65] : memref<3x1x32xf32, #tpu.memory_space<vmem>>, vector<1x1x32xf32>
    %104 = vector.shape_cast %103 : vector<1x1x32xf32> to vector<1x32xf32>
    %cst_66 = arith.constant dense<0.000000e+00> : vector<32xf32>
    %105 = vector.multi_reduction <add>, %100, %cst_66 [0] : vector<16x32xf32> to vector<32xf32>
    %106 = vector.shape_cast %105 : vector<32xf32> to vector<1x32xf32>
    %cst_67 = arith.constant 6.250000e-02 : f32
    %107 = vector.broadcast %cst_67 : f32 to vector<1x32xf32>
    %108 = arith.mulf %106, %107 : vector<1x32xf32>
    %109 = vector.broadcast %108 : vector<1x32xf32> to vector<16x32xf32>
    %110 = arith.subf %100, %109 : vector<16x32xf32>
    %111 = arith.mulf %110, %110 : vector<16x32xf32>
    %cst_68 = arith.constant dense<0.000000e+00> : vector<32xf32>
    %112 = vector.multi_reduction <add>, %111, %cst_68 [0] : vector<16x32xf32> to vector<32xf32>
    %113 = vector.shape_cast %112 : vector<32xf32> to vector<1x32xf32>
    %cst_69 = arith.constant 6.250000e-02 : f32
    %114 = vector.broadcast %cst_69 : f32 to vector<1x32xf32>
    %115 = arith.mulf %113, %114 : vector<1x32xf32>
    %cst_70 = arith.constant 9.99999974E-6 : f32
    %116 = vector.broadcast %cst_70 : f32 to vector<1x32xf32>
    %117 = arith.addf %115, %116 : vector<1x32xf32>
    %118 = math.rsqrt %117 : vector<1x32xf32>
    %119 = vector.broadcast %118 : vector<1x32xf32> to vector<16x32xf32>
    %120 = arith.mulf %110, %119 : vector<16x32xf32>
    %121 = vector.broadcast %102 : vector<1x32xf32> to vector<16x32xf32>
    %122 = arith.mulf %120, %121 : vector<16x32xf32>
    %123 = vector.broadcast %104 : vector<1x32xf32> to vector<16x32xf32>
    %124 = arith.addf %122, %123 : vector<16x32xf32>
    %125 = arith.truncf %124 : vector<16x32xf32> to vector<16x32xbf16>
    %126 = arith.extf %125 : vector<16x32xbf16> to vector<16x32xf32>
    %127 = arith.subf %124, %126 : vector<16x32xf32>
    %128 = arith.truncf %127 : vector<16x32xf32> to vector<16x32xbf16>
    %cst_71 = arith.constant dense<0.000000e+00> : vector<16x32xf32>
    %129 = tpu.matmul %1, %125, %cst_71 {dimension_numbers = #tpu.dot_dimension_numbers<[1], [0], [0], [1], [0, 0, 1, 1], [], []>} : vector<16x16xbf16>, vector<16x32xbf16>, vector<16x32xf32> -> vector<16x32xf32>
    %cst_72 = arith.constant dense<0.000000e+00> : vector<16x32xf32>
    %130 = tpu.matmul %1, %128, %cst_72 {dimension_numbers = #tpu.dot_dimension_numbers<[1], [0], [0], [1], [0, 0, 1, 1], [], []>} : vector<16x16xbf16>, vector<16x32xbf16>, vector<16x32xf32> -> vector<16x32xf32>
    %131 = arith.addf %129, %130 : vector<16x32xf32>
    %c0_73 = arith.constant 0 : index
    %c0_74 = arith.constant 0 : index
    %132 = vector.load %arg10[%c0_73, %c0_74] : memref<32x32xf32, #tpu.memory_space<vmem>>, vector<32x32xf32>
    %cst_75 = arith.constant dense<0.000000e+00> : vector<16x32xf32>
    %133 = tpu.matmul %131, %132, %cst_75 {dimension_numbers = #tpu.dot_dimension_numbers<[1], [0], [0], [1], [0, 0, 1, 1], [], []>} : vector<16x32xf32>, vector<32x32xf32>, vector<16x32xf32> -> vector<16x32xf32>
    %c2 = arith.constant 2 : index
    %c0_76 = arith.constant 0 : index
    %c0_77 = arith.constant 0 : index
    %134 = vector.load %arg12[%c2, %c0_76, %c0_77] : memref<3x1x32xf32, #tpu.memory_space<vmem>>, vector<1x1x32xf32>
    %135 = vector.shape_cast %134 : vector<1x1x32xf32> to vector<1x32xf32>
    %136 = vector.broadcast %135 : vector<1x32xf32> to vector<16x32xf32>
    %137 = arith.addf %133, %136 : vector<16x32xf32>
    %cst_78 = arith.constant 0.000000e+00 : f32
    %138 = vector.broadcast %cst_78 : f32 to vector<16x32xf32>
    %139 = arith.maximumf %137, %138 : vector<16x32xf32>
    %c2_79 = arith.constant 2 : index
    %c0_80 = arith.constant 0 : index
    %c0_81 = arith.constant 0 : index
    %140 = vector.load %arg11[%c2_79, %c0_80, %c0_81] : memref<3x32x32xf32, #tpu.memory_space<vmem>>, vector<1x32x32xf32>
    %141 = vector.shape_cast %140 : vector<1x32x32xf32> to vector<32x32xf32>
    %cst_82 = arith.constant dense<0.000000e+00> : vector<16x32xf32>
    %142 = tpu.matmul %139, %141, %cst_82 {dimension_numbers = #tpu.dot_dimension_numbers<[1], [0], [0], [1], [0, 0, 1, 1], [], []>} : vector<16x32xf32>, vector<32x32xf32>, vector<16x32xf32> -> vector<16x32xf32>
    %c2_83 = arith.constant 2 : index
    %c0_84 = arith.constant 0 : index
    %c0_85 = arith.constant 0 : index
    %143 = vector.load %arg13[%c2_83, %c0_84, %c0_85] : memref<3x1x32xf32, #tpu.memory_space<vmem>>, vector<1x1x32xf32>
    %144 = vector.shape_cast %143 : vector<1x1x32xf32> to vector<1x32xf32>
    %145 = vector.broadcast %144 : vector<1x32xf32> to vector<16x32xf32>
    %146 = arith.addf %142, %145 : vector<16x32xf32>
    %cst_86 = arith.constant 0.000000e+00 : f32
    %147 = vector.broadcast %cst_86 : f32 to vector<16x32xf32>
    %148 = arith.maximumf %146, %147 : vector<16x32xf32>
    %c2_87 = arith.constant 2 : index
    %c0_88 = arith.constant 0 : index
    %c0_89 = arith.constant 0 : index
    %149 = vector.load %arg14[%c2_87, %c0_88, %c0_89] : memref<3x1x32xf32, #tpu.memory_space<vmem>>, vector<1x1x32xf32>
    %150 = vector.shape_cast %149 : vector<1x1x32xf32> to vector<1x32xf32>
    %c2_90 = arith.constant 2 : index
    %c0_91 = arith.constant 0 : index
    %c0_92 = arith.constant 0 : index
    %151 = vector.load %arg15[%c2_90, %c0_91, %c0_92] : memref<3x1x32xf32, #tpu.memory_space<vmem>>, vector<1x1x32xf32>
    %152 = vector.shape_cast %151 : vector<1x1x32xf32> to vector<1x32xf32>
    %cst_93 = arith.constant dense<0.000000e+00> : vector<32xf32>
    %153 = vector.multi_reduction <add>, %148, %cst_93 [0] : vector<16x32xf32> to vector<32xf32>
    %154 = vector.shape_cast %153 : vector<32xf32> to vector<1x32xf32>
    %cst_94 = arith.constant 6.250000e-02 : f32
    %155 = vector.broadcast %cst_94 : f32 to vector<1x32xf32>
    %156 = arith.mulf %154, %155 : vector<1x32xf32>
    %157 = vector.broadcast %156 : vector<1x32xf32> to vector<16x32xf32>
    %158 = arith.subf %148, %157 : vector<16x32xf32>
    %159 = arith.mulf %158, %158 : vector<16x32xf32>
    %cst_95 = arith.constant dense<0.000000e+00> : vector<32xf32>
    %160 = vector.multi_reduction <add>, %159, %cst_95 [0] : vector<16x32xf32> to vector<32xf32>
    %161 = vector.shape_cast %160 : vector<32xf32> to vector<1x32xf32>
    %cst_96 = arith.constant 6.250000e-02 : f32
    %162 = vector.broadcast %cst_96 : f32 to vector<1x32xf32>
    %163 = arith.mulf %161, %162 : vector<1x32xf32>
    %cst_97 = arith.constant 9.99999974E-6 : f32
    %164 = vector.broadcast %cst_97 : f32 to vector<1x32xf32>
    %165 = arith.addf %163, %164 : vector<1x32xf32>
    %166 = math.rsqrt %165 : vector<1x32xf32>
    %167 = vector.broadcast %166 : vector<1x32xf32> to vector<16x32xf32>
    %168 = arith.mulf %158, %167 : vector<16x32xf32>
    %169 = vector.broadcast %150 : vector<1x32xf32> to vector<16x32xf32>
    %170 = arith.mulf %168, %169 : vector<16x32xf32>
    %171 = vector.broadcast %152 : vector<1x32xf32> to vector<16x32xf32>
    %172 = arith.addf %170, %171 : vector<16x32xf32>
    %173 = arith.addf %22, %83 : vector<16x32xf32>
    %174 = arith.mulf %22, %83 : vector<16x32xf32>
    %175 = arith.addf %63, %124 : vector<16x32xf32>
    %176 = arith.addf %175, %172 : vector<16x32xf32>
    %177 = arith.mulf %63, %124 : vector<16x32xf32>
    %178 = arith.mulf %177, %172 : vector<16x32xf32>
    %179 = tpu.concatenate %22, %83, %173, %174, %63, %124, %172, %176, %178 in 1 : vector<16x32xf32>, vector<16x32xf32>, vector<16x32xf32>, vector<16x32xf32>, vector<16x32xf32>, vector<16x32xf32>, vector<16x32xf32>, vector<16x32xf32>, vector<16x32xf32> -> vector<16x288xf32>
    %c0_98 = arith.constant 0 : index
    %c0_99 = arith.constant 0 : index
    %180 = vector.load %arg3[%c0_98, %c0_99] : memref<16x2xf32, #tpu.memory_space<vmem>>, vector<16x2xf32>
    %181 = vector.extract_strided_slice %180 {offsets = [0, 0], sizes = [16, 1], strides = [1, 1]} : vector<16x2xf32> to vector<16x1xf32>
    %cst_100 = arith.constant 1.000000e+00 : f32
    %182 = vector.broadcast %cst_100 : f32 to vector<16x1xf32>
    %183 = arith.subf %181, %182 : vector<16x1xf32>
    %cst_101 = arith.constant 1.000000e+30 : f32
    %184 = vector.broadcast %cst_101 : f32 to vector<16x1xf32>
    %185 = arith.mulf %183, %184 : vector<16x1xf32>
    %186 = vector.broadcast %185 : vector<16x1xf32> to vector<16x288xf32>
    %187 = arith.addf %179, %186 : vector<16x288xf32>
    %cst_102 = arith.constant dense<0xFF800000> : vector<288xf32>
    %188 = vector.multi_reduction <maximumf>, %187, %cst_102 [0] : vector<16x288xf32> to vector<288xf32>
    %189 = vector.shape_cast %188 : vector<288xf32> to vector<1x288xf32>
    %190 = vector.extract_strided_slice %180 {offsets = [0, 1], sizes = [16, 1], strides = [1, 1]} : vector<16x2xf32> to vector<16x1xf32>
    %cst_103 = arith.constant 1.000000e+00 : f32
    %191 = vector.broadcast %cst_103 : f32 to vector<16x1xf32>
    %192 = arith.subf %190, %191 : vector<16x1xf32>
    %cst_104 = arith.constant 1.000000e+30 : f32
    %193 = vector.broadcast %cst_104 : f32 to vector<16x1xf32>
    %194 = arith.mulf %192, %193 : vector<16x1xf32>
    %195 = vector.broadcast %194 : vector<16x1xf32> to vector<16x288xf32>
    %196 = arith.addf %179, %195 : vector<16x288xf32>
    %cst_105 = arith.constant dense<0xFF800000> : vector<288xf32>
    %197 = vector.multi_reduction <maximumf>, %196, %cst_105 [0] : vector<16x288xf32> to vector<288xf32>
    %198 = vector.shape_cast %197 : vector<288xf32> to vector<1x288xf32>
    %199 = tpu.concatenate %189, %198 in 0 : vector<1x288xf32>, vector<1x288xf32> -> vector<2x288xf32>
    %c0_106 = arith.constant 0 : index
    %c0_107 = arith.constant 0 : index
    %200 = vector.load %arg16[%c0_106, %c0_107] : memref<2x288xf32, #tpu.memory_space<vmem>>, vector<2x288xf32>
    tpu.vector_store %arg16[%c0_106, %c0_107], %199 {strides = array<i32>} : memref<2x288xf32, #tpu.memory_space<vmem>>, vector<2x288xf32>,
    return
  }
}

</mosaic_0001>

<bundles_post_ra>
// kernel: tpu_custom_call.1
= control target key start
LH: loop header
LB: loop body
LE: loop exit
PB: predicated region body
PF: predicated region fallthrough
CT: control target
= control target key end

     0   :  { %s1488_s0 = inlined_call_operand.vmem [shape: f32[16,96], index: 0, kind: input, shape index: {}]   ;;  %s1489_s1 = inlined_call_operand.vmem [shape: bf16[16,16], index: 1, kind: input, shape index: {}]   ;;  %s1490_s2 = inlined_call_operand.vmem [shape: f32[16,1], index: 2, kind: input, shape index: {}]   ;;  %s1491_s3 = inlined_call_operand.vmem [shape: f32[16,2], index: 3, kind: input, shape index: {}]   ;;  %s1492_s4 = inlined_call_operand.vmem [shape: f32[96,32], index: 4, kind: input, shape index: {}]   ;;  %s1493_s5 = inlined_call_operand.vmem [shape: f32[1,32], index: 5, kind: input, shape index: {}]   ;;  %s1494_s6 = inlined_call_operand.vmem [shape: f32[32,32], index: 6, kind: input, shape index: {}]   ;;  %s1495_s7 = inlined_call_operand.vmem [shape: f32[1,32], index: 7, kind: input, shape index: {}]   ;;  %s1496_s8 = inlined_call_operand.vmem [shape: f32[128,32], index: 8, kind: input, shape index: {}]   ;;  %s1497_s9 = inlined_call_operand.vmem [shape: f32[64,32], index: 9, kind: input, shape index: {}]   ;;  %s1498_s10 = inlined_call_operand.vmem [shape: f32[32,32], index: 10, kind: input, shape index: {}]   ;;  %s1499_s11 = inlined_call_operand.vmem [shape: f32[3,32,32], index: 11, kind: input, shape index: {}]   ;;  %s1500_s12 = inlined_call_operand.vmem [shape: f32[3,1,32], index: 12, kind: input, shape index: {}]   ;;  %s1501_s13 = inlined_call_operand.vmem [shape: f32[3,1,32], index: 13, kind: input, shape index: {}]   ;;  %s1502_s14 = inlined_call_operand.vmem [shape: f32[3,1,32], index: 14, kind: input, shape index: {}]   ;;  %s1503_s15 = inlined_call_operand.vmem [shape: f32[3,1,32], index: 15, kind: input, shape index: {}]   ;;  %s1504_s16 = inlined_call_operand.hbm [shape: f32[2,288], index: 16, kind: output, shape index: {}]  }
   0x1   :  { %1506 = sst [smem:[#allocation5_spill]] %s1488_s0 }
   0x2   :  { %v72_v0 = vld [vmem:[%s1492_s4 + $0x58] sm:$0xff]  ;;  %v71_v1 = vld [vmem:[%s1492_s4 + $0x50] sm:$0xff]  ;;  %v1016_v2 = vmov 0   ;;  %v70_v3 = vld [vmem:[%s1492_s4 + $0x48] sm:$0xff]  ;;  %s1507_s20 = sld [smem:[#allocation5_spill]]  ;;  %s1017_s23 = smov 32  }
   0x3   :  { %84 = vmatpush.msra.mxu0 %v72_v0  ;;  %965 = vset.pattern.permute.xlu0 %v1016_v2  ;;  %v69_v4 = vld [vmem:[%s1492_s4 + $0x40] sm:$0xff]  ;;  %v68_v5 = vld [vmem:[%s1492_s4 + $0x38] sm:$0xff]  ;;  %v67_v8 = vld [vmem:[%s1492_s4 + $0x30] sm:$0xff] }
   0x4   :  { %966 = vset.pattern.permute.xlu1 %v1016_v2  ;;  %967 = vset.pattern.permute.xlu2 %v1016_v2  ;;  %v59_v6 = vld [vmem:[%s1490_s2] sm:$0xff]  ;;  %v66_v9 = vld [vmem:[%s1492_s4 + $0x28] sm:$0xff] }
   0x5   :  { %85 = vmatpush.msra.mxu0 %v71_v1  ;;  %105 = vperm.xlu0 %965, %v59_v6   ;;  %v60_v10 = vld [vmem:[%s1490_s2 + $0x8] sm:$0xff] }
   0x7   :  { %86 = vmatpush.msra.mxu0 %v70_v3 }
   0x8   :  { %v55_v7 = vld [vmem:[%s1507_s20] sm:$0xff] }
   0x9   :  { %115 = vrot.lane.b32.xlu1 %v55_v7, %s1017_s23  ;;  %87 = vmatpush.msra.mxu0 %v69_v4 }
   0xb   :  { %88 = vmatpush.msra.mxu0 %v68_v5 }
   0xc   :  { %21 = vsyncpa [#allocation3], 0  ;;  %v65_v11 = vld [vmem:[%s1492_s4 + $0x20] sm:$0xff]  ;;  %v56_v12 = vld [vmem:[%s1507_s20 + $0x8] sm:$0xff]  ;;  %vm73_vm0 = vcmask 785408   ;;  %vm121_vm1 = vcmask 261120  }
   0xd   :  { %89 = vmatpush.msra.mxu0 %v67_v8  ;;  %110 = vperm.xlu0 %965, %v60_v10   ;;  %v64_v13 = vld [vmem:[%s1492_s4 + $0x18] sm:$0xff]  ;;  %v63_v14 = vld [vmem:[%s1492_s4 + $0x10] sm:$0xff]  ;;  %v62_v15 = vld [vmem:[%s1492_s4 + $0x8] sm:$0xff]  ;;  %vm136_vm2 = vcmask 130048   ;;  %vm426_vm6 = vcmask 523264   ;;  %vm886_vm13 = vcmask 1041408  }
   0xe   :  { %v61_v16 = vld [vmem:[%s1492_s4] sm:$0xff]  ;;  %v199_v17 = vld [vmem:[%s1496_s8 + $0x78] sm:$0xff]  ;;  %v198_v18 = vld [vmem:[%s1496_s8 + $0x70] sm:$0xff]  ;;  %vm891_vm14 = vcmask 1043458   ;;  %vm877_vm15 = vcmask 1040384   ;;  %s903_s27 = sshll.u32 %s1504_s16, 4  ;;  %s904_s27 = int_to_ptr.hbm [resolvable:$true] %s903_s27 }
   0xf   :  { %90 = vmatpush.msra.mxu0 %v66_v9  ;;  %204 = vmatpush.msra.mxu3 %v199_v17  ;;  %v197_v19 = vld [vmem:[%s1496_s8 + $0x68] sm:$0xff]  ;;  %v196_v20 = vld [vmem:[%s1496_s8 + $0x60] sm:$0xff]  ;;  %v195_v22 = vld [vmem:[%s1496_s8 + $0x58] sm:$0xff] }
  0x10   :  { %v194_v24 = vld [vmem:[%s1496_s8 + $0x50] sm:$0xff]  ;;  %v193_v27 = vld [vmem:[%s1496_s8 + $0x48] sm:$0xff]  ;;  %v192_v28 = vld [vmem:[%s1496_s8 + $0x40] sm:$0xff] }
  0x11   :  { %117 = vrot.lane.b32.xlu1 %v56_v12, %s1017_s23  ;;  %91 = vmatpush.msra.mxu0 %v65_v11  ;;  %v191_v30 = vld [vmem:[%s1496_s8 + $0x38] sm:$0xff]  ;;  %v190_v32 = vld [vmem:[%s1496_s8 + $0x30] sm:$0xff]  ;;  %v189_v37 = vld [vmem:[%s1496_s8 + $0x28] sm:$0xff] }
  0x12   :  { %205 = vmatpush.msra.mxu3 %v198_v18  ;;  %v188_v39 = vld [vmem:[%s1496_s8 + $0x20] sm:$0xff]  ;;  %v187_v50 = vld [vmem:[%s1496_s8 + $0x18] sm:$0xff]  ;;  %v186_v51 = vld [vmem:[%s1496_s8 + $0x10] sm:$0xff] }
  0x13   :  { %92 = vmatpush.msra.mxu0 %v64_v13  ;;  %v1206_v48 = vld [vmem:[%s1489_s1] sm:$0xff]  ;;  %v185_v52 = vld [vmem:[%s1496_s8 + $0x8] sm:$0xff]  ;;  %v320_v54 = vld [vmem:[%s1494_s6 + $0x18] sm:$0xff] }
  0x14   :  { %206 = vmatpush.msra.mxu3 %v197_v19  ;;  %v184_v53 = vld [vmem:[%s1496_s8] sm:$0xff]  ;;  %v319_v55 = vld [vmem:[%s1494_s6 + $0x10] sm:$0xff]  ;;  %v318_v56 = vld [vmem:[%s1494_s6 + $0x8] sm:$0xff] }
  0x15   :  { %93 = vmatpush.msra.mxu0 %v63_v14  ;;  %v317_v57 = vld [vmem:[%s1494_s6] sm:$0xff]  ;;  %v232_v58 = vld [vmem:[%s1499_s11 + $0x18] sm:$0xff]  ;;  %v231_v8 = vld [vmem:[%s1499_s11 + $0x10] sm:$0xff] }
  0x16   :  { %207 = vmatpush.msra.mxu3 %v196_v20  ;;  %v970_v62 = vld [vmem:[%s1493_s5] ss:$0 sm:$0xff]  ;;  %v230_v9 = vld [vmem:[%s1499_s11 + $0x8] sm:$0xff] }
  0x17   :  { %94 = vmatpush.msra.mxu0 %v62_v15  ;;  %v229_v10 = vld [vmem:[%s1499_s11] sm:$0xff] }
  0x18   :  { %208 = vmatpush.msra.mxu3 %v195_v22  ;;  %v971_v11 = vld [vmem:[%s1500_s12] ss:$0 sm:$0xff] }
  0x19   :  { %95 = vmatpush.msra.mxu0 %v61_v16  ;;  %v972_v19 = vld [vmem:[%s1501_s13] ss:$0 sm:$0xff] }
  0x1a   :  { %912 = vmatmul.msk.f32.vlgmr.msra.gmra.mxu0 %vm73_vm0, %v55_v7  ;;  %209 = vmatpush.msra.mxu3 %v194_v24 }
  0x1c   :  { %210 = vmatpush.msra.mxu3 %v193_v27 }
  0x1e   :  { %211 = vmatpush.msra.mxu3 %v192_v28 }
  0x20   :  { %212 = vmatpush.msra.mxu3 %v191_v30 }
  0x22   :  { %913 = vmatmul.msk.f32.gmra.mxu0 %vm73_vm0, %v56_v12  ;;  %213 = vmatpush.msra.mxu3 %v190_v32 }
  0x24   :  { %214 = vmatpush.msra.mxu3 %v189_v37 }
  0x26   :  { %215 = vmatpush.msra.mxu3 %v188_v39 }
  0x28   :  { %216 = vmatpush.msra.mxu3 %v187_v50 }
  0x2a   :  { %217 = vmatpush.msra.mxu3 %v186_v51 }
  0x2c   :  { %218 = vmatpush.msra.mxu3 %v185_v52 }
  0x2e   :  { %219 = vmatpush.msra.mxu3 %v184_v53 }
  0x77   :  { %v1171_v21 = vpop.permute.xlu0 %105 }
  0x7b   :  { %v116_v23 = vpop.permute.xlu1 %115 }
  0x7f   :  { %v1190_v31 = vpop.permute.xlu0 %110 }
  0x83   :  { %v118_v35 = vpop.permute.xlu1 %117 }
  0x97   :  { %v97_v25 = vpop.f32.mrf.mxu0 }
  0x98   :  { %v113_v26 = vmul.f32 %v1171_v21, %v97_v25 }
  0x9a   :  { %v122_v29 = vsel %vm121_vm1, %v113_v26, %v116_v23 }
  0x9b   :  { %v124_v33 = vpack.c.bf16 %v122_v29, %v122_v29 }
  0x9d   :  { %v126_v41 = vunpack.c.l.bf16 %v124_v33  ;;  %v156_v42 = vunpack.c.l.b16 %v124_v33 }
  0x9f   :  { %v100_v34 = vpop.f32.mrf.mxu0  ;;  %v128_v46 = vsub.f32 %v122_v29, %v126_v41 }
  0xa0   :  { %v114_v36 = vmul.f32 %v1190_v31, %v100_v34 }
  0xa2   :  { %v123_v38 = vsel %vm121_vm1, %v114_v36, %v118_v35 }
  0xa3   :  { %v125_v40 = vpack.c.bf16 %v123_v38, %v123_v38 }
  0xa5   :  { %v157_v43 = vunpack.c.l.b16 %v125_v40  ;;  %v127_v44 = vunpack.c.l.bf16 %v125_v40 }
  0xa7   :  { %v158_v45 = vpack.c.b16 %v157_v43, %v156_v42  ;;  %v129_v47 = vsub.f32 %v123_v38, %v127_v44 }
  0xa9   :  { %167 = vmatpush.bf16.msra.mxu2 %v158_v45  ;;  %v130_v49 = vpack.c.bf16 %v129_v47, %v128_v46 }
  0xab   :  { %147 = vmatpush.bf16.msra.mxu1 %v130_v49 }
  0xac   :  { %919 = vmatmul.msk.bf16.vlgmr.msra.gmra.mxu2 %vm136_vm2, %v1206_v48 }
  0xad   :  { %339 = vmatpush.msrb.mxu2 %v320_v54 }
  0xae   :  { %918 = vmatmul.msk.bf16.vlgmr.msra.gmra.mxu1 %vm136_vm2, %v1206_v48 }
  0xaf   :  { %340 = vmatpush.msrb.mxu2 %v319_v55  ;;  %255 = vmatpush.msrb.mxu1 %v232_v58 }
  0xb1   :  { %341 = vmatpush.msrb.mxu2 %v318_v56  ;;  %256 = vmatpush.msrb.mxu1 %v231_v8  ;;  %v418_v8 = vld [vmem:[%s1497_s9 + $0x28] sm:$0xff] }
  0xb3   :  { %342 = vmatpush.msrb.mxu2 %v317_v57  ;;  %257 = vmatpush.msrb.mxu1 %v230_v9  ;;  %v417_v9 = vld [vmem:[%s1497_s9 + $0x20] sm:$0xff] }
  0xb5   :  { %258 = vmatpush.msrb.mxu1 %v229_v10 }
 0x12b   :  { %v149_v59 = vpop.f32.mrf.mxu1 }
 0x12f   :  { %v169_v60 = vpop.f32.mrf.mxu2 }
 0x130   :  { %v170_v61 = vadd.f32 %v169_v60, %v149_v59  ;;  %v973_v59 = vld [vmem:[%s1502_s14] ss:$0 sm:$0xff] }
 0x132   :  { %v174_v63 = vmul.f32 %v170_v61, %v1171_v21  ;;  %220 = vmatmul.f32.vlgmr.msra.gmra.mxu3 %v170_v61 }
 0x133   :  { %v151_v2 = vpop.f32.mrf.mxu1 }
 0x134   :  { %v180_v0 = vadd.f32 %v970_v62, %v174_v63 }
 0x136   :  { %v1243_v1 = vmax.f32 %v180_v0, 0.0 }
 0x137   :  { %v171_v3 = vpop.f32.mrf.mxu2 }
 0x138   :  { %v172_v4 = vadd.f32 %v171_v3, %v151_v2  ;;  %922 = vmatmul.msk.f32.vlgmr.msrb.gmra.mxu2 %vm121_vm1, %v1243_v1 }
 0x13a   :  { %v175_v5 = vmul.f32 %v172_v4, %v1190_v31  ;;  %223 = vmatmul.f32.gmra.mxu3 %v172_v4 }
 0x13c   :  { %v181_v6 = vadd.f32 %v970_v62, %v175_v5  ;;  %v974_v62 = vld [vmem:[%s1503_s15] ss:$0 sm:$0xff]  ;;  %v420_v5 = vld [vmem:[%s1497_s9 + $0x38] sm:$0xff] }
 0x13d   :  { %441 = vmatpush.msrb.mxu0 %v420_v5 }
 0x13e   :  { %v1248_v7 = vmax.f32 %v181_v6, 0.0  ;;  %v419_v6 = vld [vmem:[%s1497_s9 + $0x30] sm:$0xff] }
 0x13f   :  { %442 = vmatpush.msrb.mxu0 %v419_v6 }
 0x140   :  { %923 = vmatmul.msk.f32.gmra.mxu2 %vm121_vm1, %v1248_v7 }
 0x141   :  { %443 = vmatpush.msrb.mxu0 %v418_v8 }
 0x143   :  { %444 = vmatpush.msrb.mxu0 %v417_v9 }
 0x1b5   :  { %v221_v12 = vpop.f32.mrf.mxu3 }
 0x1b6   :  { %v222_v13 = vadd.f32 %v971_v11, %v221_v12 }
 0x1b8   :  { %v227_v14 = vmax.f32 %v222_v13, 0.0 }
 0x1ba   :  { %920 = vmatmul.msk.f32.vlgmr.msrb.gmra.mxu1 %vm121_vm1, %v227_v14 }
 0x1bb   :  { %v344_v10 = vpop.f32.mrf.mxu2 }
 0x1bc   :  { %v350_v12 = vmul.f32 %v344_v10, %v1171_v21 }
 0x1bd   :  { %v224_v15 = vpop.f32.mrf.mxu3 }
 0x1be   :  { %v225_v16 = vadd.f32 %v971_v11, %v224_v15 }
 0x1c0   :  { %v228_v17 = vmax.f32 %v225_v16, 0.0 }
 0x1c2   :  { %921 = vmatmul.msk.f32.gmra.mxu1 %vm121_vm1, %v228_v17 }
 0x1c3   :  { %v347_v14 = vpop.f32.mrf.mxu2 }
 0x1c4   :  { %v351_v16 = vmul.f32 %v347_v14, %v1190_v31 }
 0x237   :  { %v260_v18 = vpop.f32.mrf.mxu1 }
 0x238   :  { %v261_v20 = vadd.f32 %v972_v19, %v260_v18 }
 0x23a   :  { %v266_v23 = vmax.f32 %v261_v20, 0.0 }
 0x23c   :  { %v270_v26 = vsel %vm121_vm1, %v266_v23, 0.0 }
 0x23f   :  { %v263_v22 = vpop.f32.mrf.mxu1 }
 0x240   :  { %v264_v24 = vadd.f32 %v972_v19, %v263_v22 }
 0x242   :  { %v267_v25 = vmax.f32 %v264_v24, 0.0 }
 0x244   :  { %v271_v27 = vsel %vm121_vm1, %v267_v25, 0.0 }
 0x245   :  { %v272_v28 = vadd.f32 %v271_v27, %v270_v26 }
 0x247   :  { %v273_v29 = vrot.slane %v272_v28, 4 }
 0x249   :  { %v274_v30 = vadd.f32 %v273_v29, %v272_v28  ;;  %v416_v29 = vld [vmem:[%s1497_s9 + $0x18] sm:$0xff] }
 0x24a   :  { %445 = vmatpush.msrb.mxu0 %v416_v29 }
 0x24b   :  { %v275_v32 = vrot.slane %v274_v30, 2 }
 0x24d   :  { %v276_v33 = vadd.f32 %v275_v32, %v274_v30  ;;  %v415_v30 = vld [vmem:[%s1497_s9 + $0x10] sm:$0xff]  ;;  %v795_v32 = vld [vmem:[%s1491_s3] sm:$0xff] }
 0x24e   :  { %446 = vmatpush.msrb.mxu0 %v415_v30 }
 0x24f   :  { %v277_v34 = vrot.slane %v276_v33, 1 }
 0x251   :  { %v278_v35 = vadd.f32 %v277_v34, %v276_v33  ;;  %v952_v33 = vadd.f32 -1.0, %v795_v32  ;;  %v796_v34 = vld [vmem:[%s1491_s3 + $0x8] sm:$0xff] }
 0x253   :  { %v279_v36 = vmul.f32 0.0625, %v278_v35  ;;  %v414_v35 = vld [vmem:[%s1497_s9 + $0x8] sm:$0xff] }
 0x254   :  { %447 = vmatpush.msrb.mxu0 %v414_v35 }
 0x255   :  { %v280_v37 = vsub.f32 %v266_v23, %v279_v36  ;;  %v281_v38 = vsub.f32 %v267_v25, %v279_v36  ;;  %v1322_v36 = vmul.f32 1e+30, %v952_v33 }
 0x257   :  { %v282_v39 = vmul.f32 %v280_v37, %v280_v37  ;;  %v283_v40 = vmul.f32 %v281_v38, %v281_v38  ;;  %803 = vperm.xlu1 %966, %v1322_v36  }
 0x259   :  { %v284_v41 = vsel %vm121_vm1, %v282_v39, 0.0  ;;  %v285_v42 = vsel %vm121_vm1, %v283_v40, 0.0 }
 0x25a   :  { %v286_v43 = vadd.f32 %v285_v42, %v284_v41 }
 0x25c   :  { %v287_v44 = vrot.slane %v286_v43, 4 }
 0x25e   :  { %v288_v45 = vadd.f32 %v287_v44, %v286_v43  ;;  %v975_v43 = vld [vmem:[%s1495_s7] ss:$0 sm:$0xff] }
 0x260   :  { %v289_v46 = vrot.slane %v288_v45, 2 }
 0x262   :  { %v290_v47 = vadd.f32 %v289_v46, %v288_v45 }
 0x264   :  { %v291_v49 = vrot.slane %v290_v47, 1 }
 0x266   :  { %v292_v50 = vadd.f32 %v291_v49, %v290_v47 }
 0x268   :  { %v293_v51 = vmul.f32 0.0625, %v292_v50 }
 0x26a   :  { %v294_v52 = vadd.f32 1e-05, %v293_v51 }
 0x26c   :  { %984 = vrsqrt.f32 %v294_v52  ;;  %vm301_vm4 = vweird.f32 %v294_v52 }
 0x272   :  { %v985_v53 = vpop.eup %984 }
 0x273   :  { %v296_v54 = vmul.f32 %v985_v53, %v294_v52  ;;  %vm302_vm3 = vweird.f32 %v985_v53 }
 0x274   :  { %vm303_vm5 = vmor %vm301_vm4, %vm302_vm3 }
 0x275   :  { %v297_v55 = vmul.f32 %v985_v53, %v296_v54 }
 0x277   :  { %v298_v56 = vmul.f32 0.5, %v297_v55  ;;  %v931_v55 = vld [vmem:[%s1499_s11 + $0x30] sm:$0xff] }
 0x279   :  { %v299_v57 = vsub.f32 1.5, %v298_v56  ;;  %v930_v56 = vld [vmem:[%s1499_s11 + $0x28] sm:$0xff] }
 0x27b   :  { %v300_v58 = vmul.f32 %v985_v53, %v299_v57  ;;  %v929_v57 = vld [vmem:[%s1499_s11 + $0x20] sm:$0xff] }
 0x27d   :  { %v304_v60 = vsel %vm303_vm5, %v985_v53, %v300_v58  ;;  %v976_v58 = vld [vmem:[%s1500_s12 + $0x1] ss:$0 sm:$0xff] }
 0x27e   :  { %v305_v61 = vmul.f32 %v304_v60, %v280_v37  ;;  %v306_v0 = vmul.f32 %v304_v60, %v281_v38  ;;  %v953_v37 = vadd.f32 -1.0, %v796_v34  ;;  %v413_v38 = vld [vmem:[%s1497_s9] sm:$0xff]  ;;  %s1018_s9 = smov 64  }
 0x27f   :  { %448 = vmatpush.msrb.mxu0 %v413_v38 }
 0x280   :  { %v310_v63 = vmul.f32 %v973_v59, %v305_v61  ;;  %v311_v3 = vmul.f32 %v973_v59, %v306_v0  ;;  %v1328_v39 = vmul.f32 1e+30, %v953_v37 }
 0x282   :  { %v1279_v2 = vadd.f32 %v974_v62, %v310_v63  ;;  %v1283_v4 = vadd.f32 %v974_v62, %v311_v3  ;;  %v977_v3 = vld [vmem:[%s1501_s13 + $0x1] ss:$0 sm:$0xff] }
 0x284   :  { %354 = vrot.lane.b32.xlu2 %v1279_v2, %s1017_s23 }
 0x28c   :  { %356 = vrot.lane.b32.xlu2 %v1283_v4, %s1017_s23 }
 0x294   :  { %808 = vperm.xlu2 %967, %v1328_v39  }
 0x2de   :  { %v355_v11 = vpop.permute.xlu2 %354 }
 0x2df   :  { %v360_v13 = vsel %vm121_vm1, %v350_v12, %v355_v11 }
 0x2e0   :  { %v362_v15 = vpack.c.bf16 %v360_v13, %v360_v13 }
 0x2e2   :  { %v364_v19 = vunpack.c.l.bf16 %v362_v15  ;;  %v385_v22 = vunpack.c.l.b16 %v362_v15 }
 0x2e4   :  { %v366_v25 = vsub.f32 %v360_v13, %v364_v19 }
 0x2e6   :  { %v357_v17 = vpop.permute.xlu2 %356 }
 0x2e7   :  { %v361_v18 = vsel %vm121_vm1, %v351_v16, %v357_v17 }
 0x2e8   :  { %v363_v20 = vpack.c.bf16 %v361_v18, %v361_v18 }
 0x2ea   :  { %v365_v23 = vunpack.c.l.bf16 %v363_v20  ;;  %v386_v24 = vunpack.c.l.b16 %v363_v20 }
 0x2ec   :  { %v367_v26 = vsub.f32 %v361_v18, %v365_v23  ;;  %v387_v27 = vpack.c.b16 %v386_v24, %v385_v22 }
 0x2ee   :  { %v368_v28 = vpack.c.bf16 %v367_v26, %v366_v25  ;;  %396 = vmatpush.bf16.msra.mxu2 %v387_v27 }
 0x2f0   :  { %376 = vmatpush.bf16.msra.mxu1 %v368_v28 }
 0x2f1   :  { %925 = vmatmul.msk.bf16.vlgmr.msra.gmra.mxu2 %vm136_vm2, %v1206_v48 }
 0x2f3   :  { %924 = vmatmul.msk.bf16.vlgmr.msra.gmra.mxu1 %vm136_vm2, %v1206_v48 }
 0x370   :  { %v378_v40 = vpop.f32.mrf.mxu1 }
 0x374   :  { %v398_v41 = vpop.f32.mrf.mxu2 }
 0x375   :  { %v399_v42 = vadd.f32 %v398_v41, %v378_v40 }
 0x377   :  { %v403_v44 = vmul.f32 %v399_v42, %v1171_v21  ;;  %927 = vmatmul.msk.f32.vlgmr.msrb.gmra.mxu0 %vm426_vm6, %v399_v42 }
 0x378   :  { %v380_v47 = vpop.f32.mrf.mxu1 }
 0x379   :  { %v409_v45 = vadd.f32 %v975_v43, %v403_v44 }
 0x37b   :  { %v1336_v46 = vmax.f32 %v409_v45, 0.0 }
 0x37c   :  { %v400_v49 = vpop.f32.mrf.mxu2 }
 0x37d   :  { %v401_v50 = vadd.f32 %v400_v49, %v380_v47  ;;  %737 = vrot.lane.b32.xlu1 %v1336_v46, %s1017_s23  ;;  %v723_v51 = vadd.f32 %v1336_v46, %v1243_v1  ;;  %v978_v49 = vld [vmem:[%s1502_s14 + $0x1] ss:$0 sm:$0xff] }
 0x37f   :  { %v404_v52 = vmul.f32 %v401_v50, %v1190_v31  ;;  %745 = vrot.lane.b32.xlu2 %v723_v51, %s1018_s9  ;;  %928 = vmatmul.msk.f32.gmra.mxu0 %vm426_vm6, %v401_v50  ;;  %v932_v31 = vld [vmem:[%s1499_s11 + $0x38] sm:$0xff] }
 0x380   :  { %486 = vmatpush.msrb.mxu1 %v932_v31  ;;  %955 = vmatpush.msrb.mxu3 %v932_v31 }
 0x381   :  { %v410_v21 = vadd.f32 %v975_v43, %v404_v52 }
 0x382   :  { %487 = vmatpush.msrb.mxu1 %v931_v55  ;;  %956 = vmatpush.msrb.mxu3 %v931_v55 }
 0x383   :  { %v1345_v53 = vmax.f32 %v410_v21, 0.0  ;;  %v979_v21 = vld [vmem:[%s1503_s15 + $0x1] ss:$0 sm:$0xff] }
 0x384   :  { %488 = vmatpush.msrb.mxu1 %v930_v56  ;;  %957 = vmatpush.msrb.mxu3 %v930_v56 }
 0x385   :  { %v724_v54 = vadd.f32 %v1345_v53, %v1248_v7 }
 0x386   :  { %489 = vmatpush.msrb.mxu1 %v929_v57  ;;  %958 = vmatpush.msrb.mxu3 %v929_v57 }
 0x387   :  { %739 = vrot.lane.b32.xlu2 %v1345_v53, %s1017_s23  ;;  %747 = vrot.lane.b32.xlu0 %v724_v54, %s1018_s9 }
 0x3f4   :  { %v450_v59 = vpop.f32.mrf.mxu0 }
 0x3f5   :  { %v451_v60 = vadd.f32 %v976_v58, %v450_v59 }
 0x3f7   :  { %v456_v61 = vmax.f32 %v451_v60, 0.0 }
 0x3f9   :  { %934 = vmatmul.msk.f32.vlgmr.msrb.gmra.mxu1 %vm121_vm1, %v456_v61 }
 0x3fc   :  { %v453_v62 = vpop.f32.mrf.mxu0 }
 0x3fd   :  { %v454_v63 = vadd.f32 %v976_v58, %v453_v62 }
 0x3ff   :  { %v457_v0 = vmax.f32 %v454_v63, 0.0 }
 0x401   :  { %935 = vmatmul.msk.f32.vlgmr.msrb.gmra.mxu3 %vm121_vm1, %v457_v0 }
 0x476   :  { %v491_v5 = vpop.f32.mrf.mxu1 }
 0x477   :  { %v492_v6 = vadd.f32 %v977_v3, %v491_v5 }
 0x479   :  { %v497_v9 = vmax.f32 %v492_v6, 0.0  ;;  %v594_v6 = vld [vmem:[%s1498_s10 + $0x18] sm:$0xff] }
 0x47a   :  { %618 = vmatpush.msra.mxu0 %v594_v6 }
 0x47b   :  { %v503_v12 = vsel %vm121_vm1, %v497_v9, 0.0 }
 0x484   :  { %v494_v8 = vpop.f32.mrf.mxu3 }
 0x485   :  { %v495_v10 = vadd.f32 %v977_v3, %v494_v8  ;;  %v593_v8 = vld [vmem:[%s1498_s10 + $0x10] sm:$0xff] }
 0x486   :  { %619 = vmatpush.msra.mxu0 %v593_v8 }
 0x487   :  { %v498_v11 = vmax.f32 %v495_v10, 0.0  ;;  %v591_v10 = vld [vmem:[%s1498_s10] sm:$0xff] }
 0x489   :  { %v504_v13 = vsel %vm121_vm1, %v498_v11, 0.0 }
 0x48a   :  { %v505_v14 = vadd.f32 %v504_v13, %v503_v12 }
 0x48c   :  { %v506_v15 = vrot.slane %v505_v14, 4 }
 0x48e   :  { %v507_v16 = vadd.f32 %v506_v15, %v505_v14 }
 0x490   :  { %v508_v17 = vrot.slane %v507_v16, 2 }
 0x492   :  { %v509_v18 = vadd.f32 %v508_v17, %v507_v16  ;;  %v945_v17 = vld [vmem:[%s1499_s11 + $0x50] sm:$0xff] }
 0x494   :  { %v510_v19 = vrot.slane %v509_v18, 1 }
 0x496   :  { %v511_v20 = vadd.f32 %v510_v19, %v509_v18  ;;  %v944_v18 = vld [vmem:[%s1499_s11 + $0x48] sm:$0xff]  ;;  %v943_v19 = vld [vmem:[%s1499_s11 + $0x40] sm:$0xff] }
 0x498   :  { %v512_v22 = vmul.f32 0.0625, %v511_v20  ;;  %v1019_v20 = vmov 1  }
 0x499   :  { %969 = vset.pattern.permute.xlu1 %v1019_v20  ;;  %968 = vset.pattern.permute.xlu0 %v1019_v20 }
 0x49a   :  { %v513_v23 = vsub.f32 %v497_v9, %v512_v22  ;;  %v514_v24 = vsub.f32 %v498_v11, %v512_v22  ;;  %v592_v9 = vld [vmem:[%s1498_s10 + $0x8] sm:$0xff]  ;;  %v980_v22 = vld [vmem:[%s1500_s12 + $0x2] ss:$0 sm:$0xff] }
 0x49b   :  { %620 = vmatpush.msra.mxu0 %v592_v9 }
 0x49c   :  { %v515_v25 = vmul.f32 %v513_v23, %v513_v23  ;;  %v516_v26 = vmul.f32 %v514_v24, %v514_v24 }
 0x49d   :  { %621 = vmatpush.msra.mxu0 %v591_v10 }
 0x49e   :  { %v517_v27 = vsel %vm121_vm1, %v515_v25, 0.0  ;;  %v518_v28 = vsel %vm121_vm1, %v516_v26, 0.0 }
 0x49f   :  { %v519_v29 = vadd.f32 %v518_v28, %v517_v27 }
 0x4a1   :  { %v520_v30 = vrot.slane %v519_v29, 4 }
 0x4a3   :  { %v521_v32 = vadd.f32 %v520_v30, %v519_v29  ;;  %v981_v30 = vld [vmem:[%s1501_s13 + $0x2] ss:$0 sm:$0xff] }
 0x4a5   :  { %v522_v33 = vrot.slane %v521_v32, 2 }
 0x4a7   :  { %v523_v34 = vadd.f32 %v522_v33, %v521_v32 }
 0x4a9   :  { %v524_v35 = vrot.slane %v523_v34, 1 }
 0x4ab   :  { %v525_v37 = vadd.f32 %v524_v35, %v523_v34 }
 0x4ad   :  { %v526_v38 = vmul.f32 0.0625, %v525_v37 }
 0x4af   :  { %v527_v40 = vadd.f32 1e-05, %v526_v38 }
 0x4b1   :  { %986 = vrsqrt.f32 %v527_v40  ;;  %vm534_vm8 = vweird.f32 %v527_v40 }
 0x4b7   :  { %v987_v41 = vpop.eup %986 }
 0x4b8   :  { %v529_v42 = vmul.f32 %v987_v41, %v527_v40  ;;  %vm535_vm7 = vweird.f32 %v987_v41 }
 0x4b9   :  { %vm536_vm9 = vmor %vm534_vm8, %vm535_vm7 }
 0x4ba   :  { %v530_v43 = vmul.f32 %v987_v41, %v529_v42 }
 0x4bc   :  { %v531_v44 = vmul.f32 0.5, %v530_v43 }
 0x4be   :  { %v532_v45 = vsub.f32 1.5, %v531_v44 }
 0x4c0   :  { %v533_v47 = vmul.f32 %v987_v41, %v532_v45 }
 0x4c2   :  { %v537_v50 = vsel %vm536_vm9, %v987_v41, %v533_v47 }
 0x4c3   :  { %v538_v51 = vmul.f32 %v537_v50, %v513_v23  ;;  %v539_v52 = vmul.f32 %v537_v50, %v514_v24 }
 0x4c5   :  { %v543_v54 = vmul.f32 %v978_v49, %v538_v51  ;;  %v544_v31 = vmul.f32 %v978_v49, %v539_v52 }
 0x4c7   :  { %v1382_v55 = vadd.f32 %v979_v21, %v543_v54  ;;  %v1384_v56 = vadd.f32 %v979_v21, %v544_v31 }
 0x4c9   :  { %763 = vrot.lane.b32.xlu1 %v1384_v56, %s1017_s23  ;;  %761 = vrot.lane.b32.xlu0 %v1382_v55, %s1017_s23  ;;  %v550_v57 = vpack.c.bf16 %v1382_v55, %v1382_v55  ;;  %v551_v58 = vpack.c.bf16 %v1384_v56, %v1384_v56  ;;  %v732_v20 = vmul.f32 %v1384_v56, %v1283_v4 }
 0x4cb   :  { %v573_v59 = vunpack.c.l.b16 %v550_v57  ;;  %v574_v60 = vunpack.c.l.b16 %v551_v58  ;;  %v552_v61 = vunpack.c.l.bf16 %v550_v57  ;;  %v553_v62 = vunpack.c.l.bf16 %v551_v58 }
 0x4cd   :  { %v575_v63 = vpack.c.b16 %v574_v60, %v573_v59  ;;  %v554_v0 = vsub.f32 %v1382_v55, %v552_v61  ;;  %v555_v3 = vsub.f32 %v1384_v56, %v553_v62 }
 0x4cf   :  { %584 = vmatpush.bf16.msrb.mxu2 %v575_v63  ;;  %v556_v5 = vpack.c.bf16 %v555_v3, %v554_v0 }
 0x4d1   :  { %564 = vmatpush.bf16.msra.mxu1 %v556_v5  ;;  %845 = vperm.xlu1 %969, %v1328_v39  }
 0x4d2   :  { %939 = vmatmul.msk.bf16.vlgmr.msrb.gmra.mxu2 %vm136_vm2, %v1206_v48 }
 0x4d4   :  { %938 = vmatmul.msk.bf16.vlgmr.msra.gmra.mxu1 %vm136_vm2, %v1206_v48  ;;  %v946_v48 = vld [vmem:[%s1499_s11 + $0x58] sm:$0xff]  ;;  %vm888_vm2 = vcmask 1043456  }
 0x4d5   :  { %659 = vmatpush.msra.mxu3 %v946_v48 }
 0x4d7   :  { %660 = vmatpush.msra.mxu3 %v945_v17 }
 0x4d9   :  { %661 = vmatpush.msra.mxu3 %v944_v18 }
 0x4db   :  { %662 = vmatpush.msra.mxu3 %v943_v19 }
 0x551   :  { %v566_v11 = vpop.f32.mrf.mxu1 }
 0x555   :  { %v586_v12 = vpop.f32.mrf.mxu2 }
 0x556   :  { %v587_v13 = vadd.f32 %v586_v12, %v566_v11  ;;  %v982_v11 = vld [vmem:[%s1502_s14 + $0x2] ss:$0 sm:$0xff]  ;;  %s1020_s14 = smov 96  }
 0x558   :  { %941 = vmatmul.msk.f32.vlgmr.msra.gmra.mxu0 %vm121_vm1, %v587_v13 }
 0x559   :  { %v568_v14 = vpop.f32.mrf.mxu1 }
 0x55d   :  { %v588_v15 = vpop.f32.mrf.mxu2 }
 0x55e   :  { %v589_v16 = vadd.f32 %v588_v15, %v568_v14  ;;  %v983_v15 = vld [vmem:[%s1503_s15 + $0x2] ss:$0 sm:$0xff]  ;;  %s1021_s15 = smov [#allocation2]  }
 0x560   :  { %942 = vmatmul.msk.f32.gmra.mxu0 %vm121_vm1, %v589_v16 }
 0x5d5   :  { %v623_v23 = vpop.f32.mrf.mxu0 }
 0x5d6   :  { %v624_v24 = vadd.f32 %v980_v22, %v623_v23  ;;  %v731_v23 = vmul.f32 %v1382_v55, %v1279_v2 }
 0x5d8   :  { %v629_v25 = vmax.f32 %v624_v24, 0.0 }
 0x5da   :  { %948 = vmatmul.msk.f32.vlgmr.msra.gmra.mxu3 %vm121_vm1, %v629_v25 }
 0x5dd   :  { %v626_v26 = vpop.f32.mrf.mxu0 }
 0x5de   :  { %v627_v27 = vadd.f32 %v980_v22, %v626_v26  ;;  %v728_v22 = vadd.f32 %v1384_v56, %v1283_v4  ;;  %v809_v26 = vpop.permute.xlu2 %808  ;;  %v727_v56 = vadd.f32 %v1382_v55, %v1279_v2 }
 0x5e0   :  { %v630_v28 = vmax.f32 %v627_v27, 0.0 }
 0x5e2   :  { %949 = vmatmul.msk.f32.gmra.mxu3 %vm121_vm1, %v630_v28  ;;  %v804_v28 = vpop.permute.xlu1 %803 }
 0x65d   :  { %v664_v29 = vpop.f32.mrf.mxu3 }
 0x65e   :  { %v665_v39 = vadd.f32 %v981_v30, %v664_v29 }
 0x660   :  { %v670_v33 = vmax.f32 %v665_v39, 0.0 }
 0x662   :  { %v676_v37 = vsel %vm121_vm1, %v670_v33, 0.0 }
 0x665   :  { %v667_v32 = vpop.f32.mrf.mxu3 }
 0x666   :  { %v668_v34 = vadd.f32 %v981_v30, %v667_v32 }
 0x668   :  { %v671_v35 = vmax.f32 %v668_v34, 0.0 }
 0x66a   :  { %v677_v38 = vsel %vm121_vm1, %v671_v35, 0.0 }
 0x66b   :  { %v678_v40 = vadd.f32 %v677_v38, %v676_v37  ;;  %v726_v37 = vmul.f32 %v1345_v53, %v1248_v7  ;;  %v746_v38 = vpop.permute.xlu2 %745 }
 0x66d   :  { %v679_v41 = vrot.slane %v678_v40, 4 }
 0x66f   :  { %v680_v42 = vadd.f32 %v679_v41, %v678_v40  ;;  %v738_v40 = vpop.permute.xlu1 %737  ;;  %v748_v41 = vpop.permute.xlu0 %747 }
 0x670   :  { %v783_v53 = vsel %vm121_vm1, %v1243_v1, %v738_v40 }
 0x671   :  { %v681_v43 = vrot.slane %v680_v42, 2 }
 0x673   :  { %v682_v44 = vadd.f32 %v681_v43, %v680_v42  ;;  %v740_v55 = vpop.permute.xlu2 %739 }
 0x675   :  { %v683_v45 = vrot.slane %v682_v44, 1 }
 0x677   :  { %v684_v47 = vadd.f32 %v683_v45, %v682_v44  ;;  %v764_v42 = vpop.permute.xlu1 %763  ;;  %v762_v43 = vpop.permute.xlu0 %761 }
 0x679   :  { %v685_v49 = vmul.f32 0.0625, %v684_v47 }
 0x67b   :  { %v686_v50 = vsub.f32 %v670_v33, %v685_v49  ;;  %v687_v51 = vsub.f32 %v671_v35, %v685_v49  ;;  %v725_v33 = vmul.f32 %v1336_v46, %v1243_v1  ;;  %v790_v49 = vsel %vm121_vm1, %v1283_v4, %v764_v42 }
 0x67d   :  { %v688_v52 = vmul.f32 %v686_v50, %v686_v50  ;;  %v689_v21 = vmul.f32 %v687_v51, %v687_v51 }
 0x67f   :  { %v690_v54 = vsel %vm121_vm1, %v688_v52, 0.0  ;;  %v691_v31 = vsel %vm121_vm1, %v689_v21, 0.0  ;;  %v846_v44 = vpop.permute.xlu1 %845 }
 0x680   :  { %v692_v57 = vadd.f32 %v691_v31, %v690_v54  ;;  %v785_v54 = vsel %vm426_vm6, %v783_v53, %v746_v38 }
 0x682   :  { %v693_v58 = vrot.slane %v692_v57, 4 }
 0x684   :  { %v694_v59 = vadd.f32 %v693_v58, %v692_v57  ;;  %v784_v57 = vsel %vm121_vm1, %v1248_v7, %v740_v55 }
 0x685   :  { %v786_v1 = vsel %vm426_vm6, %v784_v57, %v748_v41 }
 0x686   :  { %v695_v60 = vrot.slane %v694_v59, 2 }
 0x688   :  { %v696_v61 = vadd.f32 %v695_v60, %v694_v59 }
 0x68a   :  { %v697_v62 = vrot.slane %v696_v61, 1 }
 0x68c   :  { %v698_v63 = vadd.f32 %v697_v62, %v696_v61 }
 0x68e   :  { %v699_v0 = vmul.f32 0.0625, %v698_v63 }
 0x690   :  { %v700_v3 = vadd.f32 1e-05, %v699_v0 }
 0x692   :  { %988 = vrsqrt.f32 %v700_v3  ;;  %vm707_vm11 = vweird.f32 %v700_v3 }
 0x698   :  { %v989_v5 = vpop.eup %988 }
 0x699   :  { %v702_v6 = vmul.f32 %v989_v5, %v700_v3  ;;  %vm708_vm10 = vweird.f32 %v989_v5 }
 0x69a   :  { %vm709_vm12 = vmor %vm707_vm11, %vm708_vm10 }
 0x69b   :  { %v703_v8 = vmul.f32 %v989_v5, %v702_v6 }
 0x69d   :  { %v704_v9 = vmul.f32 0.5, %v703_v8 }
 0x69f   :  { %v705_v10 = vsub.f32 1.5, %v704_v9 }
 0x6a1   :  { %v706_v48 = vmul.f32 %v989_v5, %v705_v10 }
 0x6a3   :  { %v710_v12 = vsel %vm709_vm12, %v989_v5, %v706_v48 }
 0x6a4   :  { %v711_v13 = vmul.f32 %v710_v12, %v686_v50  ;;  %v712_v14 = vmul.f32 %v710_v12, %v687_v51 }
 0x6a6   :  { %v716_v16 = vmul.f32 %v982_v11, %v711_v13  ;;  %v717_v17 = vmul.f32 %v982_v11, %v712_v14 }
 0x6a8   :  { %v721_v18 = vadd.f32 %v983_v15, %v716_v16  ;;  %v722_v19 = vadd.f32 %v983_v15, %v717_v17 }
 0x6aa   :  { %769 = vrot.lane.b32.xlu2 %v721_v18, %s1018_s9  ;;  %771 = vrot.lane.b32.xlu0 %v722_v19, %s1018_s9  ;;  %v734_v24 = vmul.f32 %v732_v20, %v722_v19  ;;  %v730_v25 = vadd.f32 %v728_v22, %v722_v19  ;;  %v733_v27 = vmul.f32 %v731_v23, %v721_v18  ;;  %s901_s9 = sshll.u32 %s1021_s15, 4  ;;  %s902_s9 = int_to_ptr.vmem [resolvable:$true] %s901_s9 }
 0x6ab   :  { %v729_v34 = vadd.f32 %v727_v56, %v721_v18 }
 0x6ac   :  { %v816_v29 = vadd.f32 %v809_v26, %v734_v24  ;;  %779 = vrot.lane.b32.xlu1 %v730_v25, %s1020_s14  ;;  %v813_v30 = vadd.f32 %v804_v28, %v733_v27  ;;  %v853_v5 = vadd.f32 %v846_v44, %v734_v24 }
 0x6ae   :  { %v832_v39 = vsel %vm121_vm1, %v816_v29, -inf  ;;  %v831_v32 = vsel %vm121_vm1, %v813_v30, -inf  ;;  %v869_v16 = vsel %vm121_vm1, %v853_v5, -inf }
 0x6af   :  { %v833_v35 = vmax.f32 %v831_v32, %v832_v39 }
 0x6b1   :  { %v834_v3 = vrot.slane %v833_v35, 4 }
 0x6b2   :  { %753 = vrot.lane.b32.xlu2 %v725_v33, %s1020_s14  ;;  %777 = vrot.lane.b32.xlu0 %v729_v34, %s1020_s14 }
 0x6b3   :  { %v835_v48 = vmax.f32 %v833_v35, %v834_v3 }
 0x6b4   :  { %755 = vrot.lane.b32.xlu1 %v726_v37, %s1020_s14 }
 0x6b5   :  { %v836_v23 = vrot.slane %v835_v48, 2 }
 0x6b7   :  { %v837_v32 = vmax.f32 %v835_v48, %v836_v23 }
 0x6b9   :  { %v838_v42 = vrot.slane %v837_v32, 1 }
 0x6ba   :  { %841 = vperm.xlu0 %968, %v1322_v36   ;;  %v789_v36 = vsel %vm121_vm1, %v1279_v2, %v762_v43 }
 0x704   :  { %v770_v45 = vpop.permute.xlu2 %769 }
 0x705   :  { %v791_v21 = vsel %vm426_vm6, %v789_v36, %v770_v45 }
 0x70c   :  { %v754_v51 = vpop.permute.xlu2 %753 }
 0x70d   :  { %v787_v4 = vsel %vm73_vm0, %v785_v54, %v754_v51  ;;  %v839_v51 = vmax.f32 %v837_v32, %v838_v42 }
 0x70e   :  { %v811_v62 = vadd.f32 %v804_v28, %v787_v4 }
 0x71c   :  { %v772_v47 = vpop.permute.xlu0 %771 }
 0x71d   :  { %v792_v50 = vsel %vm426_vm6, %v790_v49, %v772_v47 }
 0x71e   :  { %v780_v46 = vpop.permute.xlu1 %779 }
 0x71f   :  { %v794_v52 = vsel %vm73_vm0, %v792_v50, %v780_v46 }
 0x720   :  { %v815_v59 = vadd.f32 %v809_v26, %v794_v52  ;;  %v852_v9 = vadd.f32 %v846_v44, %v794_v52 }
 0x724   :  { %v778_v31 = vpop.permute.xlu0 %777 }
 0x725   :  { %v793_v58 = vsel %vm73_vm0, %v791_v21, %v778_v31 }
 0x726   :  { %v812_v60 = vadd.f32 %v804_v28, %v793_v58  ;;  %v756_v61 = vpop.permute.xlu1 %755 }
 0x727   :  { %v788_v2 = vsel %vm73_vm0, %v786_v1, %v756_v61  ;;  %vm892_vm0 = vmor %vm891_vm14, %vm886_vm13 }
 0x728   :  { %v824_v63 = vmax.f32 %v812_v60, %v815_v59  ;;  %v814_v0 = vadd.f32 %v809_v26, %v788_v2  ;;  %v851_v12 = vadd.f32 %v846_v44, %v788_v2 }
 0x72a   :  { %v825_v6 = vrot.slane %v824_v63, 4  ;;  %v817_v8 = vmax.f32 %v811_v62, %v814_v0 }
 0x72c   :  { %v826_v7 = vmax.f32 %v824_v63, %v825_v6  ;;  %v818_v10 = vrot.slane %v817_v8, 4  ;;  %v842_v11 = vpop.permute.xlu0 %841 }
 0x72d   :  { %v848_v13 = vadd.f32 %v842_v11, %v787_v4  ;;  %v849_v14 = vadd.f32 %v842_v11, %v793_v58  ;;  %v850_v15 = vadd.f32 %v842_v11, %v733_v27 }
 0x72e   :  { %v819_v17 = vmax.f32 %v817_v8, %v818_v10  ;;  %v827_v18 = vrot.slane %v826_v7, 2 }
 0x72f   :  { %v854_v19 = vmax.f32 %v848_v13, %v851_v12  ;;  %v861_v20 = vmax.f32 %v849_v14, %v852_v9  ;;  %v868_v22 = vsel %vm121_vm1, %v850_v15, -inf  ;;  %vm893_vm1 = vcmask 259076  }
 0x730   :  { %v870_v24 = vmax.f32 %v868_v22, %v869_v16  ;;  %v820_v25 = vrot.slane %v819_v17, 2  ;;  %v828_v30 = vmax.f32 %v826_v7, %v827_v18  ;;  %vm894_vm3 = vmor %vm893_vm1, %vm892_vm0 }
 0x731   :  { %v855_v26 = vrot.slane %v854_v19, 4  ;;  %v862_v28 = vrot.slane %v861_v20, 4 }
 0x732   :  { %v871_v29 = vrot.slane %v870_v24, 4  ;;  %v821_v27 = vmax.f32 %v819_v17, %v820_v25  ;;  %v829_v38 = vrot.slane %v828_v30, 1 }
 0x733   :  { %v856_v39 = vmax.f32 %v854_v19, %v855_v26  ;;  %v863_v56 = vmax.f32 %v861_v20, %v862_v28 }
 0x734   :  { %v872_v33 = vmax.f32 %v870_v24, %v871_v29  ;;  %v822_v43 = vrot.slane %v821_v27, 1  ;;  %v830_v46 = vmax.f32 %v828_v30, %v829_v38 }
 0x735   :  { %v857_v34 = vrot.slane %v856_v39, 2  ;;  %v864_v35 = vrot.slane %v863_v56, 2 }
 0x736   :  { %v873_v37 = vrot.slane %v872_v33, 2  ;;  %v823_v36 = vmax.f32 %v821_v27, %v822_v43 }
 0x737   :  { %v858_v40 = vmax.f32 %v856_v39, %v857_v34  ;;  %v865_v41 = vmax.f32 %v863_v56, %v864_v35 }
 0x738   :  { %v874_v55 = vmax.f32 %v872_v33, %v873_v37 }
 0x739   :  { %v859_v44 = vrot.slane %v858_v40, 1  ;;  %v866_v45 = vrot.slane %v865_v41, 1 }
 0x73a   :  { %v875_v47 = vrot.slane %v874_v55, 1 }
 0x73b   :  { %v860_v49 = vmax.f32 %v858_v40, %v859_v44  ;;  %v867_v50 = vmax.f32 %v865_v41, %v866_v45 }
 0x73c   :  { %v876_v53 = vmax.f32 %v874_v55, %v875_v47 }
 0x73d   :  { %v879_v52 = vsel %vm877_vm15, %v830_v46, %v867_v50  ;;  %v878_v31 = vsel %vm877_vm15, %v823_v36, %v860_v49 }
 0x73e   :  { %v880_v21 = vsel %vm877_vm15, %v839_v51, %v876_v53  ;;  %v884_v54 = vrot.slane %v879_v52, 6 }
 0x73f   :  { %v885_v57 = vrot.slane %v880_v21, 4 }
 0x740   :  { %v887_v4 = vsel %vm886_vm13, %v878_v31, %v884_v54 }
 0x741   :  { %v889_v58 = vsel %vm888_vm2, %v887_v4, %v885_v57 }
 0x742   :  { %895 = vst.msk [vmem:[#allocation2] sm:$0x3f] %vm894_vm3, %v889_v58 }
 0x743   :  { %906 = dma.vmem_to_hbm [thread:$0]  %s902_s9, 96, %s904_s27, [#allocation3]  }
 0x744   :  { %1014 = dma.done.wait [#allocation3], 96  }
 0x745   :  { %1015 = vsyncadd [#allocation3], 4294967200 }
 0x746   :  { %911 = vsyncpa [#allocation3], 1 }

</bundles_post_ra>
